<compile_context>
chip_gen: v7x
topology: tpu7x:2x2x1
jax: 0.10.0
libtpu: 0.0.40
codegen_flags: <defaults>
</compile_context>

<pallas_src>
import jax
import jax.numpy as jnp
from jax.experimental import pallas as pl
from jax.experimental.pallas import tpu as pltpu


IN_DIM = 21 * 3          # 63
H1 = 64
H2 = 32
OUT = 5
TILE_B_CAP = 4096        # rows per grid step; overhead-bound below ~4K rows
SPLIT_THRESHOLD = 1024   # above this, keep >=2 grid steps so v7x's 2 TCs both work


def mlp_kernel(x_ref, w1_ref, b1_ref, w2_ref, b2_ref, w3_ref, b3_ref, o_ref):
    x = x_ref[...]                                                     # (tile, 63)
    h1 = jnp.dot(x, w1_ref[...], preferred_element_type=jnp.float32) + b1_ref[...]
    h1 = jnp.maximum(h1, 0.0).astype(w2_ref.dtype)                     # relu(fc1)
    h2 = jnp.dot(h1, w2_ref[...], preferred_element_type=jnp.float32) + b2_ref[...]
    h2 = jnp.maximum(h2, 0.0).astype(w3_ref.dtype)                     # relu(fc2)
    o_ref[...] = (jnp.dot(h2, w3_ref[...], preferred_element_type=jnp.float32)
                  + b3_ref[...]).astype(o_ref.dtype)                   # fc3


def _round_up(n, m):
    return ((n + m - 1) // m) * m


def simple_gesture_cnn(x, params, *, tile_b=TILE_B_CAP, stream_bf16=False):
    """x: (B, 63) -> (B, 5) float32 logits."""
    w1, b1, w2, b2, w3, b3 = params
    B = x.shape[0]
    assert x.shape[1] == IN_DIM

    if stream_bf16:
        # Halve the dominant HBM read stream.  Accumulation stays f32 inside
        # the kernel (preferred_element_type); biases stay f32.
        x = x.astype(jnp.bfloat16)
        w1 = w1.astype(jnp.bfloat16)
        w2 = w2.astype(jnp.bfloat16)
        w3 = w3.astype(jnp.bfloat16)

    # Batch tile: multiple of 8 (sublane granularity), capped at tile_b.
    tile = min(tile_b, _round_up(max(B, 1), 8))
    # v7x: ensure >=2 "parallel" grid steps for big batches so both TensorCores
    # get work (harmless on single-TC v5e/v6e).
    if B >= SPLIT_THRESHOLD and pl.cdiv(B, tile) < 2:
        tile = _round_up(pl.cdiv(B, 2), 8)
    grid = (pl.cdiv(B, tile),)   # ragged last block; no wrapper-side padding

    x_bytes = x.dtype.itemsize
    param_bytes = sum(int(p.size) * p.dtype.itemsize
                      for p in (w1, b1, w2, b2, w3, b3))
    flops = 2 * B * (IN_DIM * H1 + H1 * H2 + H2 * OUT)
    bytes_accessed = B * (IN_DIM * x_bytes + OUT * 4) + param_bytes

    # VMEM budget: x double-buffered, lane-padded output double-buffered,
    # h1/h2 intermediates, resident params (x2 safety).  Capped well under
    # v7x's 64 MiB physical VMEM.
    vmem_est = (2 * tile * IN_DIM * x_bytes
                + 2 * tile * 128 * 4
                + tile * (H1 + H2) * 4
                + 2 * param_bytes)
    vmem_limit = min(max(2 * vmem_est, 32 * 1024 * 1024), 56 * 1024 * 1024)

    out = pl.pallas_call(
        mlp_kernel,
        out_shape=jax.ShapeDtypeStruct((B, OUT), jnp.float32),
        grid=grid,
        in_specs=[
            pl.BlockSpec((tile, IN_DIM), lambda i: (i, 0)),   # x: tiled over batch
            pl.BlockSpec((IN_DIM, H1),  lambda i: (0, 0)),    # w1: VMEM-resident
            pl.BlockSpec((1, H1),       lambda i: (0, 0)),    # b1
            pl.BlockSpec((H1, H2),      lambda i: (0, 0)),    # w2
            pl.BlockSpec((1, H2),       lambda i: (0, 0)),    # b2
            pl.BlockSpec((H2, OUT),     lambda i: (0, 0)),    # w3
            pl.BlockSpec((1, OUT),      lambda i: (0, 0)),    # b3
        ],
        out_specs=pl.BlockSpec((tile, OUT), lambda i: (i, 0)),
        compiler_params=pltpu.CompilerParams(
            dimension_semantics=("parallel",),
            vmem_limit_bytes=int(vmem_limit)),
        cost_estimate=pl.CostEstimate(
            flops=flops, bytes_accessed=bytes_accessed, transcendentals=0),
    )(x, w1, b1, w2, b2, w3, b3)
    return out


def init_params(key):
    """Deterministic synthetic parameters (PyTorch-equivalent shapes, transposed)."""
    ks = jax.random.split(key, 6)
    w1 = jax.random.normal(ks[0], (IN_DIM, H1), jnp.float32) * 0.1
    b1 = jax.random.normal(ks[1], (1, H1), jnp.float32) * 0.01
    w2 = jax.random.normal(ks[2], (H1, H2), jnp.float32) * 0.1
    b2 = jax.random.normal(ks[3], (1, H2), jnp.float32) * 0.01
    w3 = jax.random.normal(ks[4], (H2, OUT), jnp.float32) * 0.1
    b3 = jax.random.normal(ks[5], (1, OUT), jnp.float32) * 0.01
    return (w1, b1, w2, b2, w3, b3)


def reference(x, params):
    w1, b1, w2, b2, w3, b3 = params
    h1 = jnp.maximum(x @ w1 + b1, 0.0)
    h2 = jnp.maximum(h1 @ w2 + b2, 0.0)
    return h2 @ w3 + b3


if __name__ == "__main__":
    key = jax.random.PRNGKey(0)
    k1, k2, k3, kp = jax.random.split(key, 4)
    params = init_params(kp)

    # Tiny batch (single ragged block smaller than the sublane tile).
    x_small = jax.random.normal(k1, (2, IN_DIM), jnp.float32)
    out_small = jax.block_until_ready(simple_gesture_cnn(x_small, params))
    assert out_small.shape == (2, OUT)
    assert jnp.allclose(out_small, reference(x_small, params), atol=1e-4, rtol=1e-4)

    # Awkward batch: exercises the ragged (non-tile-multiple) last block, no padding.
    x_mid = jax.random.normal(k2, (600, IN_DIM), jnp.float32)
    out_mid = jax.block_until_ready(simple_gesture_cnn(x_mid, params))
    assert out_mid.shape == (600, OUT)
    assert jnp.allclose(out_mid, reference(x_mid, params), atol=1e-4, rtol=1e-4)

    # Larger batch: exercises the >=2-step "parallel" grid (v7x megacore split).
    x_big = jax.random.normal(k3, (2048, IN_DIM), jnp.float32)
    out_big = jax.block_until_ready(simple_gesture_cnn(x_big, params))
    assert out_big.shape == (2048, OUT)
    assert jnp.allclose(out_big, reference(x_big, params), atol=1e-4, rtol=1e-4)

    # bf16-streaming path (f32 accumulation), relaxed tolerance.
    out_bf16 = jax.block_until_ready(
        simple_gesture_cnn(x_mid, params, stream_bf16=True))
    assert jnp.allclose(out_bf16, reference(x_mid, params), atol=5e-2, rtol=5e-2)

    print("KERNEL_OK")
</pallas_src>

<mosaic_0001>
module attributes {stable_mosaic.version = 11 : i64} {
  func.func @mlp_kernel(%arg0: i32, %arg1: memref<8x63xf32, #tpu.memory_space<vmem>>, %arg2: memref<63x64xf32, #tpu.memory_space<vmem>>, %arg3: memref<1x64xf32, #tpu.memory_space<vmem>>, %arg4: memref<64x32xf32, #tpu.memory_space<vmem>>, %arg5: memref<1x32xf32, #tpu.memory_space<vmem>>, %arg6: memref<32x5xf32, #tpu.memory_space<vmem>>, %arg7: memref<1x5xf32, #tpu.memory_space<vmem>>, %arg8: memref<8x5xf32, #tpu.memory_space<vmem>>) attributes {dimension_semantics = [#tpu.dimension_semantics<parallel>], iteration_bounds = array<i64: 1>, scalar_prefetch = 0 : i64, scratch_operands = 0 : i64, tpu.core_type = #tpu.core_type<tc>, window_params = [{transform_indices = @transform_0, window_bounds = array<i64: 8, 63>}, {pipeline_mode = #tpu.pipeline_mode<synchronous>, transform_indices = @transform_1, window_bounds = array<i64: 63, 64>}, {pipeline_mode = #tpu.pipeline_mode<synchronous>, transform_indices = @transform_2, window_bounds = array<i64: 1, 64>}, {pipeline_mode = #tpu.pipeline_mode<synchronous>, transform_indices = @transform_3, window_bounds = array<i64: 64, 32>}, {pipeline_mode = #tpu.pipeline_mode<synchronous>, transform_indices = @transform_4, window_bounds = array<i64: 1, 32>}, {pipeline_mode = #tpu.pipeline_mode<synchronous>, transform_indices = @transform_5, window_bounds = array<i64: 32, 5>}, {pipeline_mode = #tpu.pipeline_mode<synchronous>, transform_indices = @transform_6, window_bounds = array<i64: 1, 5>}, {transform_indices = @transform_7, window_bounds = array<i64: 8, 5>}]} {
    %c0 = arith.constant 0 : index
    %c0_0 = arith.constant 0 : index
    %0 = vector.load %arg1[%c0, %c0_0] : memref<8x63xf32, #tpu.memory_space<vmem>>, vector<8x63xf32>
    %c0_1 = arith.constant 0 : index
    %c0_2 = arith.constant 0 : index
    %1 = vector.load %arg2[%c0_1, %c0_2] : memref<63x64xf32, #tpu.memory_space<vmem>>, vector<63x64xf32>
    %cst = arith.constant dense<0.000000e+00> : vector<8x64xf32>
    %2 = tpu.matmul %0, %1, %cst {dimension_numbers = #tpu.dot_dimension_numbers<[1], [0], [0], [1], [0, 0, 1, 1], [], []>} : vector<8x63xf32>, vector<63x64xf32>, vector<8x64xf32> -> vector<8x64xf32>
    %c0_3 = arith.constant 0 : index
    %c0_4 = arith.constant 0 : index
    %3 = vector.load %arg3[%c0_3, %c0_4] : memref<1x64xf32, #tpu.memory_space<vmem>>, vector<1x64xf32>
    %4 = vector.broadcast %3 : vector<1x64xf32> to vector<8x64xf32>
    %5 = arith.addf %2, %4 : vector<8x64xf32>
    %cst_5 = arith.constant 0.000000e+00 : f32
    %6 = vector.broadcast %cst_5 : f32 to vector<8x64xf32>
    %7 = arith.maximumf %5, %6 : vector<8x64xf32>
    %c0_6 = arith.constant 0 : index
    %c0_7 = arith.constant 0 : index
    %8 = vector.load %arg4[%c0_6, %c0_7] : memref<64x32xf32, #tpu.memory_space<vmem>>, vector<64x32xf32>
    %cst_8 = arith.constant dense<0.000000e+00> : vector<8x32xf32>
    %9 = tpu.matmul %7, %8, %cst_8 {dimension_numbers = #tpu.dot_dimension_numbers<[1], [0], [0], [1], [0, 0, 1, 1], [], []>} : vector<8x64xf32>, vector<64x32xf32>, vector<8x32xf32> -> vector<8x32xf32>
    %c0_9 = arith.constant 0 : index
    %c0_10 = arith.constant 0 : index
    %10 = vector.load %arg5[%c0_9, %c0_10] : memref<1x32xf32, #tpu.memory_space<vmem>>, vector<1x32xf32>
    %11 = vector.broadcast %10 : vector<1x32xf32> to vector<8x32xf32>
    %12 = arith.addf %9, %11 : vector<8x32xf32>
    %cst_11 = arith.constant 0.000000e+00 : f32
    %13 = vector.broadcast %cst_11 : f32 to vector<8x32xf32>
    %14 = arith.maximumf %12, %13 : vector<8x32xf32>
    %c0_12 = arith.constant 0 : index
    %c0_13 = arith.constant 0 : index
    %15 = vector.load %arg6[%c0_12, %c0_13] : memref<32x5xf32, #tpu.memory_space<vmem>>, vector<32x5xf32>
    %cst_14 = arith.constant dense<0.000000e+00> : vector<8x5xf32>
    %16 = tpu.matmul %14, %15, %cst_14 {dimension_numbers = #tpu.dot_dimension_numbers<[1], [0], [0], [1], [0, 0, 1, 1], [], []>} : vector<8x32xf32>, vector<32x5xf32>, vector<8x5xf32> -> vector<8x5xf32>
    %c0_15 = arith.constant 0 : index
    %c0_16 = arith.constant 0 : index
    %17 = vector.load %arg7[%c0_15, %c0_16] : memref<1x5xf32, #tpu.memory_space<vmem>>, vector<1x5xf32>
    %18 = vector.broadcast %17 : vector<1x5xf32> to vector<8x5xf32>
    %19 = arith.addf %16, %18 : vector<8x5xf32>
    %c0_17 = arith.constant 0 : index
    %c0_18 = arith.constant 0 : index
    %20 = vector.load %arg8[%c0_17, %c0_18] : memref<8x5xf32, #tpu.memory_space<vmem>>, vector<8x5xf32>
    tpu.vector_store %arg8[%c0_17, %c0_18], %19 {strides = array<i32>} : memref<8x5xf32, #tpu.memory_space<vmem>>, vector<8x5xf32>,
    return
  }
  func.func @transform_0(%arg0: i32) -> (i32, i32) {
    %c0_i32 = arith.constant 0 : i32
    %c0_i32_0 = arith.constant 0 : i32
    return %arg0, %c0_i32 : i32, i32
  }
  func.func @transform_1(%arg0: i32) -> (i32, i32) {
    %c0_i32 = arith.constant 0 : i32
    %c0_i32_0 = arith.constant 0 : i32
    %c0_i32_1 = arith.constant 0 : i32
    return %c0_i32, %c0_i32_0 : i32, i32
  }
  func.func @transform_2(%arg0: i32) -> (i32, i32) {
    %c0_i32 = arith.constant 0 : i32
    %c0_i32_0 = arith.constant 0 : i32
    %c0_i32_1 = arith.constant 0 : i32
    return %c0_i32, %c0_i32_0 : i32, i32
  }
  func.func @transform_3(%arg0: i32) -> (i32, i32) {
    %c0_i32 = arith.constant 0 : i32
    %c0_i32_0 = arith.constant 0 : i32
    %c0_i32_1 = arith.constant 0 : i32
    return %c0_i32, %c0_i32_0 : i32, i32
  }
  func.func @transform_4(%arg0: i32) -> (i32, i32) {
    %c0_i32 = arith.constant 0 : i32
    %c0_i32_0 = arith.constant 0 : i32
    %c0_i32_1 = arith.constant 0 : i32
    return %c0_i32, %c0_i32_0 : i32, i32
  }
  func.func @transform_5(%arg0: i32) -> (i32, i32) {
    %c0_i32 = arith.constant 0 : i32
    %c0_i32_0 = arith.constant 0 : i32
    %c0_i32_1 = arith.constant 0 : i32
    return %c0_i32, %c0_i32_0 : i32, i32
  }
  func.func @transform_6(%arg0: i32) -> (i32, i32) {
    %c0_i32 = arith.constant 0 : i32
    %c0_i32_0 = arith.constant 0 : i32
    %c0_i32_1 = arith.constant 0 : i32
    return %c0_i32, %c0_i32_0 : i32, i32
  }
  func.func @transform_7(%arg0: i32) -> (i32, i32) {
    %c0_i32 = arith.constant 0 : i32
    %c0_i32_0 = arith.constant 0 : i32
    return %arg0, %c0_i32 : i32, i32
  }
}

</mosaic_0001>

<bundles_post_ra>
// kernel: tpu_custom_call.1
= control target key start
LH: loop header
LB: loop body
LE: loop exit
PB: predicated region body
PF: predicated region fallthrough
CT: control target
= control target key end

     0   :  { %12 = vsyncpa [#allocation3], 0  ;;  %v456_v2 = vmov 0.0|0.0   ;;  %vm457_vm0 = vmmov 0   ;;  %v458_v6 = vmov 0.0   ;;  %vm47_vm1 = vcmask 1046528   ;;  %s590_s0 = inlined_call_operand.vmem [shape: f32[2,63], index: 0, kind: input, shape index: {}]   ;;  %s591_s1 = inlined_call_operand.vmem [shape: f32[63,64], index: 1, kind: input, shape index: {}]   ;;  %s592_s2 = inlined_call_operand.vmem [shape: f32[1,64], index: 2, kind: input, shape index: {}]   ;;  %s593_s3 = inlined_call_operand.vmem [shape: f32[64,32], index: 3, kind: input, shape index: {}]   ;;  %s594_s4 = inlined_call_operand.vmem [shape: f32[1,32], index: 4, kind: input, shape index: {}]   ;;  %s595_s5 = inlined_call_operand.vmem [shape: f32[32,5], index: 5, kind: input, shape index: {}]   ;;  %s596_s6 = inlined_call_operand.vmem [shape: f32[1,5], index: 6, kind: input, shape index: {}]   ;;  %s597_s7 = inlined_call_operand.hbm [shape: f32[2,5], index: 7, kind: output, shape index: {}]  }
   0x1   :  { %v28_v0 = vld [vmem:[%s591_s1] sm:$0xff]  ;;  %v29_v1 = vld [vmem:[%s591_s1 + $0x8] sm:$0xff]  ;;  %394 = vmatprep.subr.bf16.mxu0 %v456_v2  ;;  %v30_v4 = vld [vmem:[%s591_s1 + $0x10] sm:$0xff]  ;;  %407 = vmatprep.subr.bf16.mxu1 %v456_v2  ;;  %vm459_vm2 = vmmov 1   ;;  %vm43_vm4 = vcmask 515072   ;;  %vm137_vm5 = vcmask 523264  }
   0x2   :  { %v395_v3 = vpack.c.bf16 %v29_v1, %v28_v0  ;;  %v31_v5 = vld [vmem:[%s591_s1 + $0x18] sm:$0xff]  ;;  %361 = vmatprep.mubr.msk.f32.mxu0 %vm457_vm0, %v458_v6  ;;  %380 = vmatprep.mubr.msk.f32.mxu1 %vm457_vm0, %v458_v6  ;;  %v32_v8 = vld [vmem:[%s591_s1 + $0x20] sm:$0xff]  ;;  %v33_v9 = vld [vmem:[%s591_s1 + $0x28] sm:$0xff]  ;;  %vm223_vm6 = vcmask 261120   ;;  %vm297_vm7 = vcmask 39936  }
   0x3   :  { %v398_v7 = vpack.c.bf16 %v31_v5, %v30_v4  ;;  %v122_v10 = vld [vmem:[%s593_s3] sm:$0xff]  ;;  %v123_v11 = vld [vmem:[%s593_s3 + $0x8] sm:$0xff]  ;;  %v124_v12 = vld [vmem:[%s593_s3 + $0x10] sm:$0xff]  ;;  %v401_v15 = vpack.c.bf16 %v33_v9, %v32_v8 }
   0x4   :  { %396 = vmatpush3.bf16.msra.mxu0 %v395_v3  ;;  %v125_v13 = vld [vmem:[%s593_s3 + $0x18] sm:$0xff]  ;;  %v408_v14 = vpack.c.bf16 %v123_v11, %v122_v10  ;;  %v34_v16 = vld [vmem:[%s591_s1 + $0x30] sm:$0xff]  ;;  %v126_v19 = vld [vmem:[%s593_s3 + $0x20] sm:$0xff] }
   0x5   :  { %397 = vmatprep.subr.bf16.mxu0 %v456_v2  ;;  %v411_v17 = vpack.c.bf16 %v125_v13, %v124_v12  ;;  %v35_v18 = vld [vmem:[%s591_s1 + $0x38] sm:$0x7f]  ;;  %v127_v20 = vld [vmem:[%s593_s3 + $0x28] sm:$0xff]  ;;  %vm405_vm3 = vmpackc.low %vm47_vm1, %vm459_vm2 }
   0x6   :  { %409 = vmatpush3.bf16.msra.mxu1 %v408_v14  ;;  %v404_v21 = vpack.c.bf16 %v35_v18, %v34_v16  ;;  %v414_v22 = vpack.c.bf16 %v127_v20, %v126_v19  ;;  %v27_v23 = vld [vmem:[%s590_s0] sm:$0xff]  ;;  %v128_v24 = vld [vmem:[%s593_s3 + $0x30] sm:$0xff]  ;;  %v129_v25 = vld [vmem:[%s593_s3 + $0x38] sm:$0xff] }
   0x7   :  { %410 = vmatprep.subr.bf16.mxu1 %v456_v2  ;;  %v417_v26 = vpack.c.bf16 %v129_v25, %v128_v24  ;;  %v212_v27 = vld [vmem:[%s595_s5] sm:$0xff]  ;;  %v213_v28 = vld [vmem:[%s595_s5 + $0x8] sm:$0xff]  ;;  %v214_v35 = vld [vmem:[%s595_s5 + $0x10] sm:$0xff] }
   0x8   :  { %399 = vmatpush3.bf16.msra.mxu0 %v398_v7  ;;  %v420_v29 = vpack.c.bf16 %v213_v28, %v212_v27  ;;  %v315_v30 = vld [vmem:[%s592_s2] ss:$0 sm:$0xff]  ;;  %v215_v36 = vld [vmem:[%s595_s5 + $0x18] sm:$0xff] }
   0x9   :  { %400 = vmatprep.subr.bf16.mxu0 %v456_v2  ;;  %v423_v37 = vpack.c.bf16 %v215_v36, %v214_v35  ;;  %v318_v38 = vld [vmem:[%s594_s4] ss:$0 sm:$0xff] }
   0xa   :  { %412 = vmatpush3.bf16.msra.mxu1 %v411_v17  ;;  %v320_v43 = vld [vmem:[%s596_s6] ss:$0 sm:$0xff] }
   0xb   :  { %413 = vmatprep.subr.bf16.mxu1 %v456_v2 }
   0xc   :  { %402 = vmatpush3.bf16.msra.mxu0 %v401_v15 }
   0xd   :  { %403 = vmatprep.subr.bf16.mxu0 %v456_v2 }
   0xe   :  { %415 = vmatpush3.bf16.msra.mxu1 %v414_v22 }
   0xf   :  { %416 = vmatprep.subr.bf16.mxu1 %v456_v2 }
  0x10   :  { %406 = vmatpush3.bf16.msk.msra.mxu0 %vm405_vm3, %v404_v21 }
  0x11   :  { %419 = vmatprep.subr.bf16.mxu0 %v456_v2 }
  0x12   :  { %418 = vmatpush3.bf16.msra.mxu1 %v417_v26 }
  0x13   :  { %362 = vmatmul.mubr.msk.f32.vlgmr.msra.gmra.mrb[0].mxu0 %vm43_vm4, %v27_v23 }
  0x14   :  { %391 = vmatprep.mubr.msk.f32.mxu0 %vm457_vm0, %v458_v6  ;;  %421 = vmatpush3.bf16.msra.mxu0 %v420_v29 }
  0x15   :  { %422 = vmatprep.subr.bf16.mxu0 %v456_v2 }
  0x18   :  { %424 = vmatpush3.bf16.msra.mxu0 %v423_v37 }
  0xe6   :  { %v117_v31 = vpop.f32.mrb[0].mxu0 }
  0xe7   :  { %v118_v32 = vadd.f32 %v315_v30, %v117_v31  ;;  %v363_v33 = vpop.f32.mrb[1].mxu0 }
  0xe9   :  { %v121_v34 = vmax.f32 %v118_v32, 0.0 }
  0xeb   :  { %381 = vmatmul.mubr.msk.f32.vlgmr.msra.gmra.mrb[0].mxu1 %vm137_vm5, %v121_v34 }
 0x1be   :  { %v207_v39 = vpop.f32.mrb[0].mxu1 }
 0x1bf   :  { %v208_v40 = vadd.f32 %v318_v38, %v207_v39  ;;  %v382_v41 = vpop.f32.mrb[1].mxu1 }
 0x1c1   :  { %v211_v42 = vmax.f32 %v208_v40, 0.0 }
 0x1c3   :  { %392 = vmatmul.mubr.msk.f32.vlgmr.msra.gmra.mrb[2].mxu0 %vm223_vm6, %v211_v42 }
 0x296   :  { %v293_v44 = vpop.f32.mrb[2].mxu0 }
 0x297   :  { %v294_v45 = vadd.f32 %v320_v43, %v293_v44  ;;  %v393_v46 = vpop.f32.mrb[3].mxu0 }
 0x299   :  { %298 = vst.msk [vmem:[#allocation2] sm:$0xff] %vm297_vm7, %v294_v45 }
 0x29a   :  { %303 = vsyncadd [#allocation3], 96  ;;  %s460_s5 = smov [#allocation2]  }
 0x29b   :  { %s304_s22 = sshll.u32 %s460_s5, 4  ;;  %s305_s22 = int_to_ptr.vmem [resolvable:$true] %s304_s22 }
 0x29c   :  { %s432_s4 = scalar_lea.vmem %s305_s22, 32  ;;  %s436_s23 = scalar_lea.vmem %s305_s22, 128 }
 0x29d   :  { %p433_p0 = scmp.ne.s32.totalorder %s305_s22, %s432_s4  ;;  %p437_p1 = scmp.lt.s32.totalorder %s305_s22, %s305_s22 }
 0x29e   :  { %p438_p2 = scmp.lt.s32.totalorder %s436_s23, %s432_s4 }
 0x2a0   :  { %p439_p3 = por %p438_p2, %p437_p1 }
 0x2a2   :  { %p440_p4 = pnand %p439_p3, %p433_p0 }
 0x2a4   :  { %443 = shalt.err (!%p440_p4)
}
 0x2a5   :  { %s444_s6 = scalar_lea.hbm %s597_s7, 32 }
 0x2a6   :  { %p445_p5 = scmp.ne.s32.totalorder %s597_s7, %s444_s6  ;;  %p448_p6 = scmp.lt.u32.totalorder %s444_s6, %s597_s7 }
 0x2a8   :  { %p450_p7 = pnand %p448_p6, %p445_p5 }
 0x2aa   :  { %453 = shalt.err (!%p450_p7)
}
 0x2ab   :  { %s461_s29 = smov 32   ;;  %s462_s30 = smov 2  }
 0x2ac   :  { %310 = dma.vmem_to_hbm [thread:$0]  %s305_s22, 32, %s597_s7, [#allocation3], %s461_s29, %s461_s29, %s462_s30  }
 0x2ad   :  { %454 = dma.done.wait [#allocation3], 128  }
 0x2ae   :  { %455 = vsyncadd [#allocation3], 4294967168 }
 0x2af   :  { %314 = vsyncpa [#allocation3], 1 }

</bundles_post_ra>
